<compile_context>
chip_gen: v7x
topology: tpu7x:2x2x1
jax: 0.10.0
libtpu: 0.0.40
codegen_flags: <defaults>
</compile_context>

<pallas_src>
import functools

import jax
import jax.numpy as jnp
from jax.experimental import pallas as pl
from jax.experimental.pallas import tpu as pltpu


def _round_up(x, m):
    return ((x + m - 1) // m) * m


def _round_down(x, m):
    return (x // m) * m


def _contrastive_kernel(lab_ref, o1_ref, o2_ref, out_ref, *, margin, eps, bm, B):
    i = pl.program_id(0)

    # Valid-row mask for the (possibly partial) tail block. Applied before the
    # arithmetic so out-of-bounds garbage rows cannot inject NaN/inf.
    rows = jax.lax.broadcasted_iota(jnp.int32, (bm, 1), 0) + i * bm
    valid = rows < B

    x1 = o1_ref[...].astype(jnp.float32)                  # (bm, D)
    x2 = o2_ref[...].astype(jnp.float32)
    diff = jnp.where(valid, x1 - x2 + eps, 0.0)            # F.pairwise_distance eps
    sq = jnp.sum(diff * diff, axis=-1, keepdims=True)      # (bm, 1) lane reduce
    d = jnp.sqrt(sq)

    # Label is resident in VMEM; slice this block's window out of it.
    row0 = pl.multiple_of(i * bm, 8)
    lab = lab_ref[pl.ds(row0, bm), :]                      # (bm, 1)

    hinge = jnp.maximum(margin - d, 0.0)
    per_row = (1.0 - lab) * sq + lab * (hinge * hinge)
    per_row = jnp.where(valid, per_row, 0.0)               # select: NaN-safe

    # One partial sum per grid step -> independent output blocks -> the grid
    # axis can be "parallel" (both TensorCores on v7x).
    out_ref[...] = jnp.full(out_ref.shape, jnp.sum(per_row), out_ref.dtype)


def contrastive_loss(output1, output2, label, margin=2.0, eps=1e-6,
                     target_block_bytes=2 * 1024 * 1024):
    """Pallas TPU implementation of ContrastiveLoss.forward (returns scalar)."""
    B, D = output1.shape
    itemsize = max(jnp.dtype(output1.dtype).itemsize,
                   jnp.dtype(output2.dtype).itemsize)
    row_bytes = max(D * itemsize, 1)

    # Byte-budgeted batch tile: ~target_block_bytes per input block per buffer,
    # capped so (2 inputs x 2 pipeline buffers) stays under ~24 MiB (v7x VMEM).
    bm = _round_down(max(target_block_bytes // row_bytes, 8), 8)
    cap = _round_down(max((24 * 1024 * 1024) // (4 * row_bytes), 8), 8)
    bm = max(min(bm, cap, _round_up(B, 8)), 8)
    # TODO(synk): for extremely large D (a single bm=8 block overflowing VMEM),
    # add an inner "arbitrary" grid axis over D with a resident (bm,1) sq
    # accumulator; not needed for typical embedding sizes.

    num_blocks = -(-B // bm)
    Bp = num_blocks * bm

    # Only the tiny label vector is padded (B * 4 bytes); the big (B, D)
    # inputs are tiled in place with in-kernel tail-row masking.
    labp = jnp.pad(label.reshape(B, 1).astype(jnp.float32),
                   ((0, Bp - B), (0, 0)))

    vmem_need = 2 * 2 * bm * D * itemsize + 2 * Bp * 4 + 2 * 8 * 128 * 4
    vmem_limit = int(min(max(vmem_need + (2 << 20), 16 << 20), 48 << 20))

    partials = pl.pallas_call(
        functools.partial(_contrastive_kernel, margin=float(margin),
                          eps=float(eps), bm=bm, B=B),
        out_shape=jax.ShapeDtypeStruct((num_blocks, 8, 128), jnp.float32),
        grid=(num_blocks,),
        in_specs=[
            pl.BlockSpec((Bp, 1), lambda i: (0, 0)),     # label: resident, 1 DMA
            pl.BlockSpec((bm, D), lambda i: (i, 0)),     # output1 tile
            pl.BlockSpec((bm, D), lambda i: (i, 0)),     # output2 tile
        ],
        out_specs=pl.BlockSpec((1, 8, 128), lambda i: (i, 0, 0)),
        compiler_params=pltpu.CompilerParams(
            dimension_semantics=("parallel",),
            vmem_limit_bytes=vmem_limit),
    )(labp, output1, output2)

    # Fold the 1/B mean in once at the end (numerically safer than per-step).
    return jnp.sum(partials[:, 0, 0]) / B


def _contrastive_loss_ref(o1, o2, label, margin=2.0, eps=1e-6):
    o1 = o1.astype(jnp.float32)
    o2 = o2.astype(jnp.float32)
    d = jnp.sqrt(jnp.sum((o1 - o2 + eps) ** 2, axis=-1))
    return jnp.mean((1.0 - label) * d ** 2
                    + label * jnp.maximum(margin - d, 0.0) ** 2)


if __name__ == "__main__":
    key = jax.random.PRNGKey(0)
    k1, k2, k3, k4, k5, k6, k7, k8, k9 = jax.random.split(key, 9)

    # case 1: small batch, not a multiple of 8 (exercises tail-row masking)
    B, D = 10, 32
    output1 = jax.random.normal(k1, (B, D), jnp.float32)
    output2 = jax.random.normal(k2, (B, D), jnp.float32)
    label = jax.random.bernoulli(k3, 0.5, (B,)).astype(jnp.float32)

    loss = jax.jit(contrastive_loss)(output1, output2, label)
    jax.block_until_ready(loss)
    ref = _contrastive_loss_ref(output1, output2, label)
    assert loss.shape == ()
    assert bool(jnp.isfinite(loss))
    assert bool(jnp.allclose(loss, ref, rtol=1e-5, atol=1e-5)), (float(loss), float(ref))

    # case 2: multi-block parallel grid + partial tail block
    B2, D2 = 300, 256
    o1b = jax.random.normal(k4, (B2, D2), jnp.float32)
    o2b = jax.random.normal(k5, (B2, D2), jnp.float32)
    lab2 = jax.random.bernoulli(k6, 0.5, (B2,)).astype(jnp.float32)

    loss2 = jax.jit(functools.partial(contrastive_loss,
                                      target_block_bytes=64 * 1024))(o1b, o2b, lab2)
    jax.block_until_ready(loss2)
    ref2 = _contrastive_loss_ref(o1b, o2b, lab2)
    assert bool(jnp.allclose(loss2, ref2, rtol=1e-5, atol=1e-4)), (float(loss2), float(ref2))

    # case 3: native bf16 inputs (no wrapper upcast copy; in-kernel cast only)
    B3, D3 = 24, 48
    o1c = jax.random.normal(k7, (B3, D3), jnp.float32).astype(jnp.bfloat16)
    o2c = jax.random.normal(k8, (B3, D3), jnp.float32).astype(jnp.bfloat16)
    lab3 = jax.random.bernoulli(k9, 0.5, (B3,)).astype(jnp.float32)

    loss3 = jax.jit(contrastive_loss)(o1c, o2c, lab3)
    jax.block_until_ready(loss3)
    ref3 = _contrastive_loss_ref(o1c, o2c, lab3)
    assert bool(jnp.allclose(loss3, ref3, rtol=1e-5, atol=1e-5)), (float(loss3), float(ref3))

    print("KERNEL_OK")
</pallas_src>

<mosaic_0001>
module attributes {stable_mosaic.version = 11 : i64} {
  func.func @_contrastive_kernel(%arg0: i32, %arg1: memref<16x1xf32, #tpu.memory_space<vmem>>, %arg2: memref<16x32xf32, #tpu.memory_space<vmem>>, %arg3: memref<16x32xf32, #tpu.memory_space<vmem>>, %arg4: memref<1x8x128xf32, #tpu.memory_space<vmem>>) attributes {dimension_semantics = [#tpu.dimension_semantics<parallel>], iteration_bounds = array<i64: 1>, scalar_prefetch = 0 : i64, scratch_operands = 0 : i64, tpu.core_type = #tpu.core_type<tc>, window_params = [{pipeline_mode = #tpu.pipeline_mode<synchronous>, transform_indices = @transform_0, window_bounds = array<i64: 16, 1>}, {transform_indices = @transform_1, window_bounds = array<i64: 16, 32>}, {transform_indices = @transform_2, window_bounds = array<i64: 16, 32>}, {transform_indices = @transform_3, window_bounds = array<i64: 1, 8, 128>}]} {
    %0 = tpu.iota {dimensions = array<i32: 0>} : vector<16x1xi32>
    %c16_i32 = arith.constant 16 : i32
    %1 = arith.muli %arg0, %c16_i32 : i32
    %2 = vector.broadcast %1 : i32 to vector<16x1xi32>
    %3 = arith.addi %0, %2 : vector<16x1xi32>
    %c10_i32 = arith.constant 10 : i32
    %4 = vector.broadcast %c10_i32 : i32 to vector<16x1xi32>
    %5 = arith.cmpi slt, %3, %4 : vector<16x1xi32>
    %c0 = arith.constant 0 : index
    %c0_0 = arith.constant 0 : index
    %6 = vector.load %arg2[%c0, %c0_0] : memref<16x32xf32, #tpu.memory_space<vmem>>, vector<16x32xf32>
    %c0_1 = arith.constant 0 : index
    %c0_2 = arith.constant 0 : index
    %7 = vector.load %arg3[%c0_1, %c0_2] : memref<16x32xf32, #tpu.memory_space<vmem>>, vector<16x32xf32>
    %8 = arith.subf %6, %7 : vector<16x32xf32>
    %cst = arith.constant 9.99999997E-7 : f32
    %9 = vector.broadcast %cst : f32 to vector<16x32xf32>
    %10 = arith.addf %8, %9 : vector<16x32xf32>
    %cst_3 = arith.constant 0.000000e+00 : f32
    %11 = vector.shape_cast %5 : vector<16x1xi1> to vector<16x1xi1>
    %12 = vector.broadcast %11 : vector<16x1xi1> to vector<16x32xi1>
    %13 = vector.broadcast %cst_3 : f32 to vector<16x32xf32>
    %14 = arith.select %12, %10, %13 : vector<16x32xi1>, vector<16x32xf32>
    %15 = arith.mulf %14, %14 : vector<16x32xf32>
    %cst_4 = arith.constant dense<0.000000e+00> : vector<16xf32>
    %16 = vector.multi_reduction <add>, %15, %cst_4 [1] : vector<16x32xf32> to vector<16xf32>
    %17 = vector.shape_cast %16 : vector<16xf32> to vector<16x1xf32>
    %18 = math.sqrt %17 : vector<16x1xf32>
    %c16_i32_5 = arith.constant 16 : i32
    %19 = arith.muli %arg0, %c16_i32_5 : i32
    %20 = tpu.assume_multiple %19, 8 : i32
    %21 = arith.index_cast %20 : i32 to index
    %c0_6 = arith.constant 0 : index
    %22 = vector.load %arg1[%21, %c0_6] : memref<16x1xf32, #tpu.memory_space<vmem>>, vector<16x1xf32>
    %cst_7 = arith.constant 2.000000e+00 : f32
    %23 = vector.broadcast %cst_7 : f32 to vector<16x1xf32>
    %24 = arith.subf %23, %18 : vector<16x1xf32>
    %cst_8 = arith.constant 0.000000e+00 : f32
    %25 = vector.broadcast %cst_8 : f32 to vector<16x1xf32>
    %26 = arith.maximumf %24, %25 : vector<16x1xf32>
    %cst_9 = arith.constant 1.000000e+00 : f32
    %27 = vector.broadcast %cst_9 : f32 to vector<16x1xf32>
    %28 = arith.subf %27, %22 : vector<16x1xf32>
    %29 = arith.mulf %28, %17 : vector<16x1xf32>
    %30 = arith.mulf %26, %26 : vector<16x1xf32>
    %31 = arith.mulf %22, %30 : vector<16x1xf32>
    %32 = arith.addf %29, %31 : vector<16x1xf32>
    %cst_10 = arith.constant 0.000000e+00 : f32
    %33 = vector.broadcast %cst_10 : f32 to vector<16x1xf32>
    %34 = arith.select %5, %32, %33 : vector<16x1xi1>, vector<16x1xf32>
    %35 = vector.shape_cast %34 : vector<16x1xf32> to vector<1x16x1xf32>
    %cst_11 = arith.constant dense<0.000000e+00> : vector<1xf32>
    %36 = vector.multi_reduction <add>, %35, %cst_11 [1, 2] : vector<1x16x1xf32> to vector<1xf32>
    %37 = vector.shape_cast %36 : vector<1xf32> to vector<1x1x1xf32>
    %38 = vector.extract %37[0, 0, 0] : f32 from vector<1x1x1xf32>
    %39 = vector.broadcast %38 : f32 to vector<1x8x128xf32>
    %c0_12 = arith.constant 0 : index
    %c0_13 = arith.constant 0 : index
    %c0_14 = arith.constant 0 : index
    %40 = vector.load %arg4[%c0_12, %c0_13, %c0_14] : memref<1x8x128xf32, #tpu.memory_space<vmem>>, vector<1x8x128xf32>
    tpu.vector_store %arg4[%c0_12, %c0_13, %c0_14], %39 {strides = array<i32>} : memref<1x8x128xf32, #tpu.memory_space<vmem>>, vector<1x8x128xf32>,
    return
  }
  func.func @transform_0(%arg0: i32) -> (i32, i32) {
    %c0_i32 = arith.constant 0 : i32
    %c0_i32_0 = arith.constant 0 : i32
    %c0_i32_1 = arith.constant 0 : i32
    return %c0_i32, %c0_i32_0 : i32, i32
  }
  func.func @transform_1(%arg0: i32) -> (i32, i32) {
    %c0_i32 = arith.constant 0 : i32
    %c0_i32_0 = arith.constant 0 : i32
    return %arg0, %c0_i32 : i32, i32
  }
  func.func @transform_2(%arg0: i32) -> (i32, i32) {
    %c0_i32 = arith.constant 0 : i32
    %c0_i32_0 = arith.constant 0 : i32
    return %arg0, %c0_i32 : i32, i32
  }
  func.func @transform_3(%arg0: i32) -> (i32, i32, i32) {
    %c0_i32 = arith.constant 0 : i32
    %c0_i32_0 = arith.constant 0 : i32
    %c0_i32_1 = arith.constant 0 : i32
    return %arg0, %c0_i32, %c0_i32_0 : i32, i32, i32
  }
}

</mosaic_0001>

<bundles_post_ra>
// kernel: contrastive_loss.1
= control target key start
LH: loop header
LB: loop body
LE: loop exit
PB: predicated region body
PF: predicated region fallthrough
CT: control target
= control target key end

     0   :  { %v14_v0 = vlaneseq  ;;  %vm39_vm1 = vcmask 261120   ;;  %vm79_vm6 = vcmask 7168   ;;  %s147_s1 = inlined_call_operand.vmem [shape: f32[10,32], index: 1, kind: input, shape index: {}]   ;;  %s148_s2 = inlined_call_operand.vmem [shape: f32[10,32], index: 2, kind: input, shape index: {}]   ;;  %s149_s0 = inlined_call_operand.vmem [shape: f32[16,1], index: 0, kind: input, shape index: {}]   ;;  %s150_s3 = inlined_call_operand.vmem [shape: f32[1,8,128], index: 3, kind: output, shape index: {}]  }
   0x1   :  { %v24_v1 = vld [vmem:[%s147_s1 + $0x8] sm:$0xff]  ;;  %v23_v3 = vld [vmem:[%s147_s1] sm:$0xff] }
   0x2   :  { %v26_v2 = vld [vmem:[%s148_s2 + $0x8] sm:$0xff]  ;;  %v15_v4 = vshrl.u32 %v14_v0, 7  ;;  %v25_v6 = vld [vmem:[%s148_s2] sm:$0xff] }
   0x3   :  { %v28_v5 = vsub.f32 %v24_v1, %v26_v2  ;;  %v27_v7 = vsub.f32 %v23_v3, %v25_v6  ;;  %v62_v24 = vld [vmem:[%s149_s0 + $0x8] sm:$0xff]  ;;  %v61_v32 = vld [vmem:[%s149_s0] sm:$0xff] }
   0x4   :  { %v16_v8 = vadd.s32 8, %v15_v4  ;;  %v68_v30 = vsub.f32 1.0, %v62_v24  ;;  %v67_v36 = vsub.f32 1.0, %v61_v32 }
   0x5   :  { %v30_v9 = vadd.f32 1e-06, %v28_v5  ;;  %v29_v10 = vadd.f32 1e-06, %v27_v7 }
   0x6   :  { %vm22_vm0 = vcmp.lt.s32.totalorder %v16_v8, 10 }
   0x7   :  { %v36_v11 = vsel %vm22_vm0, %v30_v9, 0.0  ;;  %v37_v13 = vmul.f32 %v29_v10, %v29_v10 }
   0x8   :  { %v38_v12 = vmul.f32 %v36_v11, %v36_v11 }
   0x9   :  { %v40_v15 = vsel %vm39_vm1, %v37_v13, 0.0 }
   0xa   :  { %v43_v14 = vsel %vm39_vm1, %v38_v12, 0.0 }
   0xb   :  { %44 = vadd.xlane.f32.xlu0 %v43_v14 }
   0xf   :  { %41 = vadd.xlane.f32.xlu0 %v40_v15 }
  0x98   :  { %v45_v16 = vpop.xlane.xlu0 %44 }
  0x99   :  { %100 = vrsqrt.f32 %v45_v16  ;;  %vm55_vm2 = vcmp.eq.f32.partialorder %v45_v16, inf  ;;  %v58_v20 = vand.u32 2147483648, %v45_v16  ;;  %vm57_vm3 = vcmp.eq.f32.partialorder %v45_v16, 0.0 }
  0x9a   :  { %v70_v37 = vmul.f32 %v68_v30, %v45_v16 }
  0x9c   :  { %v42_v17 = vpop.xlane.xlu0 %41 }
  0x9d   :  { %102 = vrsqrt.f32 %v42_v17  ;;  %vm48_vm4 = vcmp.eq.f32.partialorder %v42_v17, inf  ;;  %v51_v27 = vand.u32 2147483648, %v42_v17  ;;  %vm50_vm5 = vcmp.eq.f32.partialorder %v42_v17, 0.0 }
  0x9e   :  { %v69_v41 = vmul.f32 %v67_v36, %v42_v17 }
  0xa3   :  { %v101_v18 = vpop.eup %100 }
  0xa4   :  { %v54_v19 = vmul.f32 %v101_v18, %v45_v16 }
  0xa6   :  { %v56_v21 = vsel %vm55_vm2, %v45_v16, %v54_v19 }
  0xa7   :  { %v103_v22 = vpop.eup %102  ;;  %v59_v23 = vsel %vm57_vm3, %v58_v20, %v56_v21 }
  0xa8   :  { %v47_v25 = vmul.f32 %v103_v22, %v42_v17  ;;  %v64_v26 = vsub.f32 2.0, %v59_v23 }
  0xaa   :  { %v49_v28 = vsel %vm48_vm4, %v42_v17, %v47_v25  ;;  %v66_v29 = vmax.f32 %v64_v26, 0.0 }
  0xab   :  { %v52_v31 = vsel %vm50_vm5, %v51_v27, %v49_v28 }
  0xac   :  { %v63_v33 = vsub.f32 2.0, %v52_v31  ;;  %v72_v34 = vmul.f32 %v66_v29, %v66_v29 }
  0xae   :  { %v65_v35 = vmax.f32 %v63_v33, 0.0  ;;  %v74_v38 = vmul.f32 %v72_v34, %v62_v24 }
  0xb0   :  { %v71_v39 = vmul.f32 %v65_v35, %v65_v35  ;;  %v76_v40 = vadd.f32 %v74_v38, %v70_v37 }
  0xb2   :  { %v73_v42 = vmul.f32 %v71_v39, %v61_v32  ;;  %v78_v43 = vsel %vm22_vm0, %v76_v40, 0.0 }
  0xb3   :  { %v81_v46 = vsel %vm79_vm6, %v78_v43, 0.0 }
  0xb4   :  { %v75_v44 = vadd.f32 %v73_v42, %v69_v41 }
  0xb6   :  { %v80_v45 = vsel %vm79_vm6, %v75_v44, 0.0 }
  0xb7   :  { %v82_v47 = vadd.f32 %v81_v46, %v80_v45 }
  0xb9   :  { %83 = vadd.xlane.f32.xlu1 %v82_v47 }
 0x146   :  { %v84_v48 = vpop.xlane.xlu1 %83 }
 0x147   :  { %v85_v49 = vrot.slane %v84_v48, 4 }
 0x149   :  { %v86_v50 = vadd.f32 %v85_v49, %v84_v48 }
 0x14b   :  { %v87_v51 = vrot.slane %v86_v50, 2 }
 0x14d   :  { %v88_v52 = vadd.f32 %v87_v51, %v86_v50 }
 0x14f   :  { %v89_v53 = vrot.slane %v88_v52, 1 }
 0x151   :  { %v90_v54 = vadd.f32 %v89_v53, %v88_v52 }
 0x153   :  { %98 = vpush %v90_v54 }
 0x184   :  { %s99_s0 = spop %98 }
 0x185   :  { %v92_v55 = vstv %s99_s0 }
 0x186   :  { %93 = vst [vmem:[%s150_s3] sm:$0xff] %v92_v55 }

</bundles_post_ra>
